<compile_context>
chip_gen: v6e
topology: v6e:2x2x1
jax: 0.10.0
libtpu: 0.0.40
codegen_flags: <defaults>
</compile_context>

<pallas_src>
import functools

import jax
import jax.numpy as jnp
from jax.experimental import pallas as pl
from jax.experimental.pallas import tpu as pltpu


MATMUL_DTYPE = jnp.bfloat16     # MXU-native on v5e/v6e/v7x; accumulation stays f32
BN_EPS = 1e-5
NORM_EPS = 1e-12                # guard against an all-zero input row (0/0 -> NaN)
VMEM_LIMIT_BYTES = 48 * 1024 * 1024


def _stage1_kernel(x_ref, w1_ref, b1_ref, w2_ref, h2_ref, psum_ref, psq_ref):
    """L2-normalize, Linear(3D->5D)+ReLU, Linear(5D->5D) (bias-free), plus
    per-tile partial sums for the batch-norm statistics."""
    x = x_ref[...]                                           # (3, bt, D) f32
    ss = jnp.sum(x * x, axis=-1, keepdims=True)              # (3, bt, 1)
    xn = (x * jax.lax.rsqrt(jnp.maximum(ss, NORM_EPS))).astype(MATMUL_DTYPE)

    # Split-W1 accumulation (no lane-axis concat): three K=D dots.
    h = jnp.dot(xn[0], w1_ref[0].astype(MATMUL_DTYPE),
                preferred_element_type=jnp.float32)
    h = h + jnp.dot(xn[1], w1_ref[1].astype(MATMUL_DTYPE),
                    preferred_element_type=jnp.float32)
    h = h + jnp.dot(xn[2], w1_ref[2].astype(MATMUL_DTYPE),
                    preferred_element_type=jnp.float32)
    h = jnp.maximum(h + b1_ref[...], 0.0)                    # (bt, 5D) f32

    # Linear(5D -> 5D). b2 omitted: training-mode BatchNorm subtracts the
    # batch mean immediately afterwards, so the bias cancels exactly.
    h2 = jnp.dot(h.astype(MATMUL_DTYPE), w2_ref[...].astype(MATMUL_DTYPE),
                 preferred_element_type=jnp.float32)         # (bt, 5D) f32
    h2_ref[...] = h2

    # One-pass batch-norm partial statistics for this batch tile.
    psum_ref[...] = jnp.sum(h2, axis=0, keepdims=True)[None]        # (1,1,5D)
    psq_ref[...] = jnp.sum(h2 * h2, axis=0, keepdims=True)[None]    # (1,1,5D)


def _stage2_kernel(h2_ref, scale_ref, shift_ref, w3_ref, b3_ref, o_ref):
    """Folded BatchNorm (scale/shift), ReLU, Linear(5D -> D)."""
    h = jnp.maximum(h2_ref[...] * scale_ref[...] + shift_ref[...], 0.0)
    o_ref[...] = (jnp.dot(h.astype(MATMUL_DTYPE), w3_ref[...].astype(MATMUL_DTYPE),
                          preferred_element_type=jnp.float32) + b3_ref[...])


@functools.partial(jax.jit, static_argnames=("batch_tile",))
def concat_transform(x, params, batch_tile=256):
    """x: stacked (3, B, D) float32.  params: as produced by init_params."""
    _, B, D = x.shape
    D5 = 5 * D
    w1, b1, w2, b2, gamma, beta, w3, b3 = params
    del b2  # cancels exactly against the training-mode BatchNorm mean subtraction
    w1r = w1.reshape(3, D, D5)   # per-input weight blocks for the split-W1 dots

    bt = min(batch_tile, B)
    assert B % bt == 0, "batch must be divisible by the batch tile"
    nt = B // bt

    cparams = pltpu.CompilerParams(
        dimension_semantics=("parallel",),       # dual-TensorCore sharding on v7x
        vmem_limit_bytes=VMEM_LIMIT_BYTES,
    )

    # Stage 1: batch-tiled trunk + per-tile BatchNorm partial sums.
    h2, psum, psq = pl.pallas_call(
        _stage1_kernel,
        grid=(nt,),
        in_specs=[
            pl.BlockSpec((3, bt, D), lambda i: (0, i, 0)),    # stacked inputs
            pl.BlockSpec((3, D, D5), lambda i: (0, 0, 0)),    # W1 (resident)
            pl.BlockSpec((1, D5), lambda i: (0, 0)),          # b1
            pl.BlockSpec((D5, D5), lambda i: (0, 0)),         # W2 (resident)
        ],
        out_specs=(
            pl.BlockSpec((bt, D5), lambda i: (i, 0)),         # h2
            pl.BlockSpec((1, 1, D5), lambda i: (i, 0, 0)),    # per-tile sum
            pl.BlockSpec((1, 1, D5), lambda i: (i, 0, 0)),    # per-tile sum-of-sq
        ),
        out_shape=(
            jax.ShapeDtypeStruct((B, D5), jnp.float32),
            jax.ShapeDtypeStruct((nt, 1, D5), jnp.float32),
            jax.ShapeDtypeStruct((nt, 1, D5), jnp.float32),
        ),
        compiler_params=cparams,
    )(x, w1r, b1, w2)

    # Tiny cross-tile combine of the BN statistics + gamma/beta fold (plain JAX).
    mean = jnp.sum(psum, axis=0) / B                   # (1, 5D)
    var = jnp.sum(psq, axis=0) / B - mean * mean       # biased variance
    inv_std = jax.lax.rsqrt(var + BN_EPS)
    scale = gamma * inv_std                            # (1, 5D)
    shift = beta - mean * scale                        # (1, 5D)

    # Stage 2: folded BN + ReLU + final linear, batch tiled.
    out = pl.pallas_call(
        _stage2_kernel,
        grid=(nt,),
        in_specs=[
            pl.BlockSpec((bt, D5), lambda i: (i, 0)),
            pl.BlockSpec((1, D5), lambda i: (0, 0)),
            pl.BlockSpec((1, D5), lambda i: (0, 0)),
            pl.BlockSpec((D5, D), lambda i: (0, 0)),
            pl.BlockSpec((1, D), lambda i: (0, 0)),
        ],
        out_specs=pl.BlockSpec((bt, D), lambda i: (i, 0)),
        out_shape=jax.ShapeDtypeStruct((B, D), jnp.float32),
        compiler_params=cparams,
    )(h2, scale, shift, w3, b3)
    return out


def init_params(key, embed_dim):
    D = embed_dim
    k = jax.random.split(key, 6)
    # Linear weights stored as (in, out); deterministic small-scale init.
    w1 = jax.random.normal(k[0], (3 * D, 5 * D), jnp.float32) * 0.05
    b1 = jax.random.normal(k[1], (1, 5 * D), jnp.float32) * 0.05
    w2 = jax.random.normal(k[2], (5 * D, 5 * D), jnp.float32) * 0.05
    b2 = jax.random.normal(k[3], (1, 5 * D), jnp.float32) * 0.05
    gamma = jnp.ones((1, 5 * D), jnp.float32)      # BatchNorm1d weight init
    beta = jnp.zeros((1, 5 * D), jnp.float32)      # BatchNorm1d bias init
    w3 = jax.random.normal(k[4], (5 * D, D), jnp.float32) * 0.05
    b3 = jax.random.normal(k[5], (1, D), jnp.float32) * 0.05
    return (w1, b1, w2, b2, gamma, beta, w3, b3)


def reference(x1, x2, x3, params, matmul_dtype=MATMUL_DTYPE):
    """Faithful forward (concat + b2 + two-pass BN stats) with the same MXU
    operand dtype policy as the kernel, so the numerical check stays tight."""
    w1, b1, w2, b2, gamma, beta, w3, b3 = params
    mm = lambda a, w: jnp.dot(a.astype(matmul_dtype), w.astype(matmul_dtype),
                              preferred_element_type=jnp.float32)
    norm = lambda v: v / jnp.linalg.norm(v, axis=1, keepdims=True)
    f = jnp.concatenate([norm(x1), norm(x2), norm(x3)], axis=1)
    h = jnp.maximum(mm(f, w1) + b1, 0.0)
    h = mm(h, w2) + b2
    mean = jnp.mean(h, axis=0, keepdims=True)
    var = jnp.mean((h - mean) ** 2, axis=0, keepdims=True)
    h = (h - mean) / jnp.sqrt(var + BN_EPS) * gamma + beta
    h = jnp.maximum(h, 0.0)
    return mm(h, w3) + b3


if __name__ == "__main__":
    B, D = 8, 32                     # batch=8, embed_dim=32
    key = jax.random.PRNGKey(0)
    kx1, kx2, kx3, kp = jax.random.split(key, 4)
    x1 = jax.random.normal(kx1, (B, D), jnp.float32)
    x2 = jax.random.normal(kx2, (B, D), jnp.float32)
    x3 = jax.random.normal(kx3, (B, D), jnp.float32)
    params = init_params(kp, D)

    x_stacked = jnp.stack([x1, x2, x3], axis=0)      # (3, B, D): single input DMA
    out = concat_transform(x_stacked, params)
    out = jax.block_until_ready(out)

    ref = reference(x1, x2, x3, params)
    assert out.shape == (B, D)
    # Kernel deviations (split-W1, dropped b2, one-pass variance, rsqrt) are
    # mathematically exact; only f32 rounding-order differences remain.
    assert jnp.allclose(out, ref, atol=2e-3, rtol=2e-3), \
        float(jnp.max(jnp.abs(out - ref)))
    print("KERNEL_OK")
</pallas_src>

<mosaic_0001>
module attributes {stable_mosaic.version = 11 : i64} {
  func.func @_stage1_kernel(%arg0: i32, %arg1: memref<3x8x32xf32, #tpu.memory_space<vmem>>, %arg2: memref<3x32x160xf32, #tpu.memory_space<vmem>>, %arg3: memref<1x160xf32, #tpu.memory_space<vmem>>, %arg4: memref<160x160xf32, #tpu.memory_space<vmem>>, %arg5: memref<8x160xf32, #tpu.memory_space<vmem>>, %arg6: memref<1x1x160xf32, #tpu.memory_space<vmem>>, %arg7: memref<1x1x160xf32, #tpu.memory_space<vmem>>) attributes {dimension_semantics = [#tpu.dimension_semantics<parallel>], iteration_bounds = array<i64: 1>, scalar_prefetch = 0 : i64, scratch_operands = 0 : i64, tpu.core_type = #tpu.core_type<tc>, window_params = [{transform_indices = @transform_0, window_bounds = array<i64: 3, 8, 32>}, {pipeline_mode = #tpu.pipeline_mode<synchronous>, transform_indices = @transform_1, window_bounds = array<i64: 3, 32, 160>}, {pipeline_mode = #tpu.pipeline_mode<synchronous>, transform_indices = @transform_2, window_bounds = array<i64: 1, 160>}, {pipeline_mode = #tpu.pipeline_mode<synchronous>, transform_indices = @transform_3, window_bounds = array<i64: 160, 160>}, {transform_indices = @transform_4, window_bounds = array<i64: 8, 160>}, {transform_indices = @transform_5, window_bounds = array<i64: 1, 1, 160>}, {transform_indices = @transform_6, window_bounds = array<i64: 1, 1, 160>}]} {
    %c0 = arith.constant 0 : index
    %c0_0 = arith.constant 0 : index
    %c0_1 = arith.constant 0 : index
    %0 = vector.load %arg1[%c0, %c0_0, %c0_1] : memref<3x8x32xf32, #tpu.memory_space<vmem>>, vector<3x8x32xf32>
    %1 = arith.mulf %0, %0 : vector<3x8x32xf32>
    %cst = arith.constant dense<0.000000e+00> : vector<3x8xf32>
    %2 = vector.multi_reduction <add>, %1, %cst [2] : vector<3x8x32xf32> to vector<3x8xf32>
    %3 = vector.shape_cast %2 : vector<3x8xf32> to vector<3x8x1xf32>
    %cst_2 = arith.constant 9.99999996E-13 : f32
    %4 = vector.broadcast %cst_2 : f32 to vector<3x8x1xf32>
    %5 = arith.maximumf %3, %4 : vector<3x8x1xf32>
    %6 = math.rsqrt %5 : vector<3x8x1xf32>
    %7 = vector.broadcast %6 : vector<3x8x1xf32> to vector<3x8x32xf32>
    %8 = arith.mulf %0, %7 : vector<3x8x32xf32>
    %9 = arith.truncf %8 : vector<3x8x32xf32> to vector<3x8x32xbf16>
    %10 = vector.extract_strided_slice %9 {offsets = [0, 0, 0], sizes = [1, 8, 32], strides = [1, 1, 1]} : vector<3x8x32xbf16> to vector<1x8x32xbf16>
    %11 = vector.shape_cast %10 : vector<1x8x32xbf16> to vector<8x32xbf16>
    %c0_3 = arith.constant 0 : index
    %c0_4 = arith.constant 0 : index
    %c0_5 = arith.constant 0 : index
    %12 = vector.load %arg2[%c0_3, %c0_4, %c0_5] : memref<3x32x160xf32, #tpu.memory_space<vmem>>, vector<1x32x160xf32>
    %13 = vector.shape_cast %12 : vector<1x32x160xf32> to vector<32x160xf32>
    %14 = arith.truncf %13 : vector<32x160xf32> to vector<32x160xbf16>
    %cst_6 = arith.constant dense<0.000000e+00> : vector<8x160xf32>
    %15 = tpu.matmul %11, %14, %cst_6 {dimension_numbers = #tpu.dot_dimension_numbers<[1], [0], [0], [1], [0, 0, 1, 1], [], []>} : vector<8x32xbf16>, vector<32x160xbf16>, vector<8x160xf32> -> vector<8x160xf32>
    %16 = vector.extract_strided_slice %9 {offsets = [1, 0, 0], sizes = [1, 8, 32], strides = [1, 1, 1]} : vector<3x8x32xbf16> to vector<1x8x32xbf16>
    %17 = vector.shape_cast %16 : vector<1x8x32xbf16> to vector<8x32xbf16>
    %c1 = arith.constant 1 : index
    %c0_7 = arith.constant 0 : index
    %c0_8 = arith.constant 0 : index
    %18 = vector.load %arg2[%c1, %c0_7, %c0_8] : memref<3x32x160xf32, #tpu.memory_space<vmem>>, vector<1x32x160xf32>
    %19 = vector.shape_cast %18 : vector<1x32x160xf32> to vector<32x160xf32>
    %20 = arith.truncf %19 : vector<32x160xf32> to vector<32x160xbf16>
    %cst_9 = arith.constant dense<0.000000e+00> : vector<8x160xf32>
    %21 = tpu.matmul %17, %20, %cst_9 {dimension_numbers = #tpu.dot_dimension_numbers<[1], [0], [0], [1], [0, 0, 1, 1], [], []>} : vector<8x32xbf16>, vector<32x160xbf16>, vector<8x160xf32> -> vector<8x160xf32>
    %22 = arith.addf %15, %21 : vector<8x160xf32>
    %23 = vector.extract_strided_slice %9 {offsets = [2, 0, 0], sizes = [1, 8, 32], strides = [1, 1, 1]} : vector<3x8x32xbf16> to vector<1x8x32xbf16>
    %24 = vector.shape_cast %23 : vector<1x8x32xbf16> to vector<8x32xbf16>
    %c2 = arith.constant 2 : index
    %c0_10 = arith.constant 0 : index
    %c0_11 = arith.constant 0 : index
    %25 = vector.load %arg2[%c2, %c0_10, %c0_11] : memref<3x32x160xf32, #tpu.memory_space<vmem>>, vector<1x32x160xf32>
    %26 = vector.shape_cast %25 : vector<1x32x160xf32> to vector<32x160xf32>
    %27 = arith.truncf %26 : vector<32x160xf32> to vector<32x160xbf16>
    %cst_12 = arith.constant dense<0.000000e+00> : vector<8x160xf32>
    %28 = tpu.matmul %24, %27, %cst_12 {dimension_numbers = #tpu.dot_dimension_numbers<[1], [0], [0], [1], [0, 0, 1, 1], [], []>} : vector<8x32xbf16>, vector<32x160xbf16>, vector<8x160xf32> -> vector<8x160xf32>
    %29 = arith.addf %22, %28 : vector<8x160xf32>
    %c0_13 = arith.constant 0 : index
    %c0_14 = arith.constant 0 : index
    %30 = vector.load %arg3[%c0_13, %c0_14] : memref<1x160xf32, #tpu.memory_space<vmem>>, vector<1x160xf32>
    %31 = vector.broadcast %30 : vector<1x160xf32> to vector<8x160xf32>
    %32 = arith.addf %29, %31 : vector<8x160xf32>
    %cst_15 = arith.constant 0.000000e+00 : f32
    %33 = vector.broadcast %cst_15 : f32 to vector<8x160xf32>
    %34 = arith.maximumf %32, %33 : vector<8x160xf32>
    %35 = arith.truncf %34 : vector<8x160xf32> to vector<8x160xbf16>
    %c0_16 = arith.constant 0 : index
    %c0_17 = arith.constant 0 : index
    %36 = vector.load %arg4[%c0_16, %c0_17] : memref<160x160xf32, #tpu.memory_space<vmem>>, vector<160x160xf32>
    %37 = arith.truncf %36 : vector<160x160xf32> to vector<160x160xbf16>
    %cst_18 = arith.constant dense<0.000000e+00> : vector<8x160xf32>
    %38 = tpu.matmul %35, %37, %cst_18 {dimension_numbers = #tpu.dot_dimension_numbers<[1], [0], [0], [1], [0, 0, 1, 1], [], []>} : vector<8x160xbf16>, vector<160x160xbf16>, vector<8x160xf32> -> vector<8x160xf32>
    %c0_19 = arith.constant 0 : index
    %c0_20 = arith.constant 0 : index
    %39 = vector.load %arg5[%c0_19, %c0_20] : memref<8x160xf32, #tpu.memory_space<vmem>>, vector<8x160xf32>
    tpu.vector_store %arg5[%c0_19, %c0_20], %38 {strides = array<i32>} : memref<8x160xf32, #tpu.memory_space<vmem>>, vector<8x160xf32>,
    %cst_21 = arith.constant dense<0.000000e+00> : vector<160xf32>
    %40 = vector.multi_reduction <add>, %38, %cst_21 [0] : vector<8x160xf32> to vector<160xf32>
    %41 = vector.shape_cast %40 : vector<160xf32> to vector<1x160xf32>
    %42 = vector.shape_cast %41 : vector<1x160xf32> to vector<1x1x160xf32>
    %c0_22 = arith.constant 0 : index
    %c0_23 = arith.constant 0 : index
    %c0_24 = arith.constant 0 : index
    %43 = vector.load %arg6[%c0_22, %c0_23, %c0_24] : memref<1x1x160xf32, #tpu.memory_space<vmem>>, vector<1x1x160xf32>
    tpu.vector_store %arg6[%c0_22, %c0_23, %c0_24], %42 {strides = array<i32>} : memref<1x1x160xf32, #tpu.memory_space<vmem>>, vector<1x1x160xf32>,
    %44 = arith.mulf %38, %38 : vector<8x160xf32>
    %cst_25 = arith.constant dense<0.000000e+00> : vector<160xf32>
    %45 = vector.multi_reduction <add>, %44, %cst_25 [0] : vector<8x160xf32> to vector<160xf32>
    %46 = vector.shape_cast %45 : vector<160xf32> to vector<1x160xf32>
    %47 = vector.shape_cast %46 : vector<1x160xf32> to vector<1x1x160xf32>
    %c0_26 = arith.constant 0 : index
    %c0_27 = arith.constant 0 : index
    %c0_28 = arith.constant 0 : index
    %48 = vector.load %arg7[%c0_26, %c0_27, %c0_28] : memref<1x1x160xf32, #tpu.memory_space<vmem>>, vector<1x1x160xf32>
    tpu.vector_store %arg7[%c0_26, %c0_27, %c0_28], %47 {strides = array<i32>} : memref<1x1x160xf32, #tpu.memory_space<vmem>>, vector<1x1x160xf32>,
    return
  }
  func.func @transform_0(%arg0: i32) -> (i32, i32, i32) {
    %c0_i32 = arith.constant 0 : i32
    %c0_i32_0 = arith.constant 0 : i32
    %c0_i32_1 = arith.constant 0 : i32
    return %c0_i32, %arg0, %c0_i32_0 : i32, i32, i32
  }
  func.func @transform_1(%arg0: i32) -> (i32, i32, i32) {
    %c0_i32 = arith.constant 0 : i32
    %c0_i32_0 = arith.constant 0 : i32
    %c0_i32_1 = arith.constant 0 : i32
    %c0_i32_2 = arith.constant 0 : i32
    return %c0_i32, %c0_i32_0, %c0_i32_1 : i32, i32, i32
  }
  func.func @transform_2(%arg0: i32) -> (i32, i32) {
    %c0_i32 = arith.constant 0 : i32
    %c0_i32_0 = arith.constant 0 : i32
    %c0_i32_1 = arith.constant 0 : i32
    return %c0_i32, %c0_i32_0 : i32, i32
  }
  func.func @transform_3(%arg0: i32) -> (i32, i32) {
    %c0_i32 = arith.constant 0 : i32
    %c0_i32_0 = arith.constant 0 : i32
    %c0_i32_1 = arith.constant 0 : i32
    return %c0_i32, %c0_i32_0 : i32, i32
  }
  func.func @transform_4(%arg0: i32) -> (i32, i32) {
    %c0_i32 = arith.constant 0 : i32
    %c0_i32_0 = arith.constant 0 : i32
    return %arg0, %c0_i32 : i32, i32
  }
  func.func @transform_5(%arg0: i32) -> (i32, i32, i32) {
    %c0_i32 = arith.constant 0 : i32
    %c0_i32_0 = arith.constant 0 : i32
    %c0_i32_1 = arith.constant 0 : i32
    return %arg0, %c0_i32, %c0_i32_0 : i32, i32, i32
  }
  func.func @transform_6(%arg0: i32) -> (i32, i32, i32) {
    %c0_i32 = arith.constant 0 : i32
    %c0_i32_0 = arith.constant 0 : i32
    %c0_i32_1 = arith.constant 0 : i32
    return %arg0, %c0_i32, %c0_i32_0 : i32, i32, i32
  }
}

module attributes {stable_mosaic.version = 11 : i64} {
  func.func @_stage2_kernel(%arg0: i32, %arg1: memref<8x160xf32, #tpu.memory_space<vmem>>, %arg2: memref<1x160xf32, #tpu.memory_space<vmem>>, %arg3: memref<1x160xf32, #tpu.memory_space<vmem>>, %arg4: memref<160x32xf32, #tpu.memory_space<vmem>>, %arg5: memref<1x32xf32, #tpu.memory_space<vmem>>, %arg6: memref<8x32xf32, #tpu.memory_space<vmem>>) attributes {dimension_semantics = [#tpu.dimension_semantics<parallel>], iteration_bounds = array<i64: 1>, scalar_prefetch = 0 : i64, scratch_operands = 0 : i64, tpu.core_type = #tpu.core_type<tc>, window_params = [{transform_indices = @transform_0, window_bounds = array<i64: 8, 160>}, {pipeline_mode = #tpu.pipeline_mode<synchronous>, transform_indices = @transform_1, window_bounds = array<i64: 1, 160>}, {pipeline_mode = #tpu.pipeline_mode<synchronous>, transform_indices = @transform_2, window_bounds = array<i64: 1, 160>}, {pipeline_mode = #tpu.pipeline_mode<synchronous>, transform_indices = @transform_3, window_bounds = array<i64: 160, 32>}, {pipeline_mode = #tpu.pipeline_mode<synchronous>, transform_indices = @transform_4, window_bounds = array<i64: 1, 32>}, {transform_indices = @transform_5, window_bounds = array<i64: 8, 32>}]} {
    %c0 = arith.constant 0 : index
    %c0_0 = arith.constant 0 : index
    %0 = vector.load %arg1[%c0, %c0_0] : memref<8x160xf32, #tpu.memory_space<vmem>>, vector<8x160xf32>
    %c0_1 = arith.constant 0 : index
    %c0_2 = arith.constant 0 : index
    %1 = vector.load %arg2[%c0_1, %c0_2] : memref<1x160xf32, #tpu.memory_space<vmem>>, vector<1x160xf32>
    %2 = vector.broadcast %1 : vector<1x160xf32> to vector<8x160xf32>
    %3 = arith.mulf %0, %2 : vector<8x160xf32>
    %c0_3 = arith.constant 0 : index
    %c0_4 = arith.constant 0 : index
    %4 = vector.load %arg3[%c0_3, %c0_4] : memref<1x160xf32, #tpu.memory_space<vmem>>, vector<1x160xf32>
    %5 = vector.broadcast %4 : vector<1x160xf32> to vector<8x160xf32>
    %6 = arith.addf %3, %5 : vector<8x160xf32>
    %cst = arith.constant 0.000000e+00 : f32
    %7 = vector.broadcast %cst : f32 to vector<8x160xf32>
    %8 = arith.maximumf %6, %7 : vector<8x160xf32>
    %9 = arith.truncf %8 : vector<8x160xf32> to vector<8x160xbf16>
    %c0_5 = arith.constant 0 : index
    %c0_6 = arith.constant 0 : index
    %10 = vector.load %arg4[%c0_5, %c0_6] : memref<160x32xf32, #tpu.memory_space<vmem>>, vector<160x32xf32>
    %11 = arith.truncf %10 : vector<160x32xf32> to vector<160x32xbf16>
    %cst_7 = arith.constant dense<0.000000e+00> : vector<8x32xf32>
    %12 = tpu.matmul %9, %11, %cst_7 {dimension_numbers = #tpu.dot_dimension_numbers<[1], [0], [0], [1], [0, 0, 1, 1], [], []>} : vector<8x160xbf16>, vector<160x32xbf16>, vector<8x32xf32> -> vector<8x32xf32>
    %c0_8 = arith.constant 0 : index
    %c0_9 = arith.constant 0 : index
    %13 = vector.load %arg5[%c0_8, %c0_9] : memref<1x32xf32, #tpu.memory_space<vmem>>, vector<1x32xf32>
    %14 = vector.broadcast %13 : vector<1x32xf32> to vector<8x32xf32>
    %15 = arith.addf %12, %14 : vector<8x32xf32>
    %c0_10 = arith.constant 0 : index
    %c0_11 = arith.constant 0 : index
    %16 = vector.load %arg6[%c0_10, %c0_11] : memref<8x32xf32, #tpu.memory_space<vmem>>, vector<8x32xf32>
    tpu.vector_store %arg6[%c0_10, %c0_11], %15 {strides = array<i32>} : memref<8x32xf32, #tpu.memory_space<vmem>>, vector<8x32xf32>,
    return
  }
  func.func @transform_0(%arg0: i32) -> (i32, i32) {
    %c0_i32 = arith.constant 0 : i32
    %c0_i32_0 = arith.constant 0 : i32
    return %arg0, %c0_i32 : i32, i32
  }
  func.func @transform_1(%arg0: i32) -> (i32, i32) {
    %c0_i32 = arith.constant 0 : i32
    %c0_i32_0 = arith.constant 0 : i32
    %c0_i32_1 = arith.constant 0 : i32
    return %c0_i32, %c0_i32_0 : i32, i32
  }
  func.func @transform_2(%arg0: i32) -> (i32, i32) {
    %c0_i32 = arith.constant 0 : i32
    %c0_i32_0 = arith.constant 0 : i32
    %c0_i32_1 = arith.constant 0 : i32
    return %c0_i32, %c0_i32_0 : i32, i32
  }
  func.func @transform_3(%arg0: i32) -> (i32, i32) {
    %c0_i32 = arith.constant 0 : i32
    %c0_i32_0 = arith.constant 0 : i32
    %c0_i32_1 = arith.constant 0 : i32
    return %c0_i32, %c0_i32_0 : i32, i32
  }
  func.func @transform_4(%arg0: i32) -> (i32, i32) {
    %c0_i32 = arith.constant 0 : i32
    %c0_i32_0 = arith.constant 0 : i32
    %c0_i32_1 = arith.constant 0 : i32
    return %c0_i32, %c0_i32_0 : i32, i32
  }
  func.func @transform_5(%arg0: i32) -> (i32, i32) {
    %c0_i32 = arith.constant 0 : i32
    %c0_i32_0 = arith.constant 0 : i32
    return %arg0, %c0_i32 : i32, i32
  }
}

</mosaic_0001>

<bundles_post_ra>
// kernel: concat_transform.3
= control target key start
LH: loop header
LB: loop body
LE: loop exit
PB: predicated region body
PF: predicated region fallthrough
CT: control target
= control target key end

     0   :  { %v26_v3 = vlaneseq  ;;  %v178_v4 = vmov 0   ;;  %s300_s0 = inlined_call_operand.vmem [shape: f32[8,160], index: 0, kind: input, shape index: {}]   ;;  %s301_s1 = inlined_call_operand.vmem [shape: f32[1,160], index: 1, kind: input, shape index: {}]   ;;  %s302_s2 = inlined_call_operand.vmem [shape: f32[1,160], index: 2, kind: input, shape index: {}]   ;;  %s303_s3 = inlined_call_operand.vmem [shape: f32[160,32], index: 3, kind: input, shape index: {}]   ;;  %s304_s4 = inlined_call_operand.vmem [shape: f32[1,32], index: 4, kind: input, shape index: {}]   ;;  %s305_s5 = inlined_call_operand.hbm [shape: f32[8,32], index: 5, kind: output, shape index: {}]  }
   0x1   :  { %v70_v0 = vld [vmem:[%s303_s3 + $0x70] sm:$0xff]  ;;  %v71_v1 = vld [vmem:[%s303_s3 + $0x78] sm:$0xff]  ;;  %v68_v2 = vld [vmem:[%s303_s3 + $0x60] sm:$0xff]  ;;  %97 = vmatprep.subr.bf16.mxu0 %v178_v4 }
   0x2   :  { %v83_v5 = vpack.c.bf16 %v71_v1, %v70_v0  ;;  %v69_v6 = vld [vmem:[%s303_s3 + $0x68] sm:$0xff]  ;;  %v27_v7 = vshrl.u32 %v26_v3, 7  ;;  %v66_v9 = vld [vmem:[%s303_s3 + $0x50] sm:$0xff]  ;;  %v67_v10 = vld [vmem:[%s303_s3 + $0x58] sm:$0xff] }
   0x3   :  { %v82_v8 = vpack.c.bf16 %v69_v6, %v68_v2  ;;  %v81_v12 = vpack.c.bf16 %v67_v10, %v66_v9  ;;  %v23_v13 = vld [vmem:[%s300_s0 + $0x8] sm:$0xff]  ;;  %v24_v14 = vld [vmem:[%s301_s1] sm:$0x3] }
   0x4   :  { %98 = vmatpush1.bf16.msra.mxu0 %v83_v5  ;;  %v32_v11 = vsub.s32 1, %v27_v7  ;;  %v38_v15 = vld [vmem:[%s302_s2] sm:$0x3]  ;;  %v65_v17 = vld [vmem:[%s303_s3 + $0x48] sm:$0xff] }
   0x5   :  { %99 = vmatprep.subr.bf16.mxu0 %v178_v4  ;;  %v64_v16 = vld [vmem:[%s303_s3 + $0x40] sm:$0xff] }
   0x6   :  { %v33_v18 = vrot.slane %v24_v14, %v32_v11  ;;  %v47_v19 = vrot.slane %v38_v15, %v32_v11 }
   0x8   :  { %100 = vmatpush1.bf16.msra.mxu0 %v82_v8 }
   0x9   :  { %101 = vmatprep.subr.bf16.mxu0 %v178_v4 }
   0xa   :  { %10 = vsyncpa [#allocation3], 0  ;;  %v37_v20 = vmul.f32 %v33_v18, %v23_v13  ;;  %v80_v21 = vpack.c.bf16 %v65_v17, %v64_v16  ;;  %v62_v22 = vld [vmem:[%s303_s3 + $0x30] sm:$0xff]  ;;  %v63_v23 = vld [vmem:[%s303_s3 + $0x38] sm:$0xff]  ;;  %vm93_vm0 = vcmask 261120   ;;  %v28_v30 = vsub.s32 0, %v27_v7 }
   0xb   :  { %v79_v26 = vpack.c.bf16 %v63_v23, %v62_v22  ;;  %v60_v27 = vld [vmem:[%s303_s3 + $0x20] sm:$0xff]  ;;  %v61_v28 = vld [vmem:[%s303_s3 + $0x28] sm:$0xff]  ;;  %v58_v32 = vld [vmem:[%s303_s3 + $0x10] sm:$0xff]  ;;  %s179_s1 = smov [#allocation2]  }
   0xc   :  { %102 = vmatpush1.bf16.msra.mxu0 %v81_v12  ;;  %v51_v24 = vadd.f32 %v47_v19, %v37_v20  ;;  %v78_v31 = vpack.c.bf16 %v61_v28, %v60_v27  ;;  %v59_v33 = vld [vmem:[%s303_s3 + $0x18] sm:$0xff]  ;;  %v29_v34 = vrot.slane %v24_v14, %v28_v30  ;;  %v22_v36 = vld [vmem:[%s300_s0] sm:$0xff]  ;;  %v57_v38 = vld [vmem:[%s303_s3 + $0x8] sm:$0xff]  ;;  %v43_v39 = vrot.slane %v38_v15, %v28_v30  ;;  %s144_s2 = sshll.u32 %s179_s1, 4  ;;  %s145_s2 = int_to_ptr.vmem [resolvable:$true] %s144_s2 }
   0xd   :  { %103 = vmatprep.subr.bf16.mxu0 %v178_v4  ;;  %v77_v35 = vpack.c.bf16 %v59_v33, %v58_v32  ;;  %v56_v37 = vld [vmem:[%s303_s3] sm:$0xff]  ;;  %v74_v42 = vld [vmem:[%s303_s3 + $0x90] sm:$0xff]  ;;  %v75_v43 = vld [vmem:[%s303_s3 + $0x98] sm:$0xff]  ;;  %p161_p1 = scmp.lt.s32.totalorder %s145_s2, %s145_s2 }
   0xe   :  { %v53_v25 = vmax.f32 %v51_v24, 0.0  ;;  %v36_v40 = vmul.f32 %v29_v34, %v22_v36  ;;  %v76_v41 = vpack.c.bf16 %v57_v38, %v56_v37  ;;  %v85_v45 = vpack.c.bf16 %v75_v43, %v74_v42  ;;  %v72_v46 = vld [vmem:[%s303_s3 + $0x80] sm:$0xff]  ;;  %v73_v47 = vld [vmem:[%s303_s3 + $0x88] sm:$0xff]  ;;  %s156_s3 = scalar_lea.vmem %s145_s2, 128 }
   0xf   :  { %v84_v49 = vpack.c.bf16 %v73_v47, %v72_v46  ;;  %v152_v51 = vld [vmem:[%s304_s4] ss:$0 sm:$0xff]  ;;  %p157_p0 = scmp.ne.s32.totalorder %s145_s2, %s156_s3  ;;  %p162_p2 = scmp.lt.s32.totalorder %s156_s3, %s156_s3 }
  0x10   :  { %104 = vmatpush1.bf16.msra.mxu0 %v80_v21  ;;  %v55_v29 = vpack.c.bf16 %v53_v25, %v53_v25  ;;  %v50_v44 = vadd.f32 %v43_v39, %v36_v40 }
  0x11   :  { %105 = vmatprep.subr.bf16.mxu0 %v178_v4  ;;  %p163_p3 = por %p162_p2, %p161_p1 }
  0x12   :  { %153 = vmatprep.mubr.msk.bf16.mxu0 %vm93_vm0, %v55_v29  ;;  %v52_v48 = vmax.f32 %v50_v44, 0.0 }
  0x13   :  { %p164_p4 = pnand %p163_p3, %p157_p0 }
  0x14   :  { %106 = vmatpush1.bf16.msra.mxu0 %v79_v26  ;;  %v54_v50 = vpack.c.bf16 %v52_v48, %v52_v48 }
  0x15   :  { %107 = vmatprep.subr.bf16.mxu0 %v178_v4 }
  0x18   :  { %108 = vmatpush1.bf16.msra.mxu0 %v78_v31 }
  0x19   :  { %109 = vmatprep.subr.bf16.mxu0 %v178_v4 }
  0x1c   :  { %110 = vmatpush1.bf16.msra.mxu0 %v77_v35 }
  0x1d   :  { %111 = vmatprep.subr.bf16.mxu0 %v178_v4 }
  0x20   :  { %112 = vmatpush1.bf16.msra.mxu0 %v76_v41 }
  0x21   :  { %125 = vmatprep.subr.bf16.mxu0 %v178_v4 }
  0x24   :  { %126 = vmatpush2.bf16.msra.mxu0 %v85_v45 }
  0x25   :  { %127 = vmatprep.subr.bf16.mxu0 %v178_v4 }
  0x28   :  { %128 = vmatpush2.bf16.msra.mxu0 %v84_v49 }
  0x2b   :  { %130 = vmatmul.mubr.bf16.vlgmr.msra.gmra.mxu0 %v54_v50 }
  0xeb   :  { %v131_v52 = vpop.f32.mrf.mxu0 }
  0xec   :  { %v132_v53 = vadd.f32 %v152_v51, %v131_v52 }
  0xed   :  { %v133_v54 = vpop.f32.mrf.mxu0 }
  0xee   :  { %137 = vst.msk [vmem:[#allocation2] sm:$0xff] %vm93_vm0, %v132_v53 }
  0xef   :  { %v134_v55 = vpop.f32.mrf.mxu0 }
  0xf0   :  { %167 = shalt.err (!%p164_p4)
}
  0xf1   :  { %147 = dma.vmem_to_hbm [thread:$0]  %s145_s2, 128, %s305_s5, [#allocation3]   ;;  %v135_v56 = vpop.f32.mrf.mxu0 }
  0xf2   :  { %176 = dma.done.wait [#allocation3], 128  }
  0xf3   :  { %177 = vsyncadd [#allocation3], 4294967168 }
  0xf4   :  { %151 = vsyncpa [#allocation3], 1 }

// kernel: concat_transform.2
= control target key start
LH: loop header
LB: loop body
LE: loop exit
PB: predicated region body
PF: predicated region fallthrough
CT: control target
= control target key end

     0   :  { %vm27_vm0 = vcmask 261120   ;;  %v455_v12 = vmov 0   ;;  %s738_s0 = inlined_call_operand.vmem [shape: f32[3,8,32], index: 0, kind: input, shape index: {}]   ;;  %s739_s1 = inlined_call_operand.vmem [shape: f32[3,32,160], index: 1, kind: input, shape index: {}]   ;;  %s740_s3 = inlined_call_operand.vmem [shape: f32[160,160], index: 3, kind: input, shape index: {}]   ;;  %s741_s2 = inlined_call_operand.vmem [shape: f32[1,160], index: 2, kind: input, shape index: {}]   ;;  %s742_s4 = inlined_call_operand.vmem [shape: f32[8,160], index: 4, kind: output, shape index: {0}]   ;;  %s743_s5 = inlined_call_operand.vmem [shape: f32[1,1,160], index: 5, kind: output, shape index: {1}]   ;;  %s744_s6 = inlined_call_operand.vmem [shape: f32[1,1,160], index: 6, kind: output, shape index: {2}]  }
   0x1   :  { %v495_v0 = vld [vmem:[%s738_s0 + $0x8] sm:$0xff]  ;;  %v500_v1 = vld [vmem:[%s738_s0] sm:$0xff]  ;;  %v505_v2 = vld [vmem:[%s738_s0 + $0x10] sm:$0xff]  ;;  %109 = vmatprep.mubr.bf16.mxu0 %v455_v12 }
   0x2   :  { %v25_v3 = vmul.f32 %v495_v0, %v495_v0  ;;  %v24_v4 = vmul.f32 %v500_v1, %v500_v1  ;;  %v26_v5 = vmul.f32 %v505_v2, %v505_v2  ;;  %v432_v9 = vld [vmem:[%s739_s1 + $0x68] sm:$0xff]  ;;  %v434_v10 = vld [vmem:[%s739_s1 + $0x78] sm:$0xff]  ;;  %v431_v11 = vld [vmem:[%s739_s1 + $0x60] sm:$0xff] }
   0x3   :  { %v73_v13 = vpack.c.bf16 %v434_v10, %v432_v9  ;;  %v433_v14 = vld [vmem:[%s739_s1 + $0x70] sm:$0xff]  ;;  %v428_v15 = vld [vmem:[%s739_s1 + $0x48] sm:$0xff]  ;;  %v430_v16 = vld [vmem:[%s739_s1 + $0x58] sm:$0xff] }
   0x4   :  { %v31_v6 = vsel %vm27_vm0, %v25_v3, 0.0  ;;  %v34_v7 = vsel %vm27_vm0, %v26_v5, 0.0  ;;  %v28_v8 = vsel %vm27_vm0, %v24_v4, 0.0  ;;  %v72_v17 = vpack.c.bf16 %v433_v14, %v431_v11  ;;  %v427_v19 = vld [vmem:[%s739_s1 + $0x40] sm:$0xff]  ;;  %v429_v20 = vld [vmem:[%s739_s1 + $0x50] sm:$0xff]  ;;  %v54_v21 = vld [vmem:[%s739_s1 + $0x28] sm:$0xff] }
   0x5   :  { %32 = vadd.xlane.f32.xlu0 %v31_v6  ;;  %35 = vadd.xlane.f32.xlu1 %v34_v7  ;;  %v71_v18 = vpack.c.bf16 %v430_v16, %v428_v15  ;;  %v56_v22 = vld [vmem:[%s739_s1 + $0x38] sm:$0xff]  ;;  %v70_v23 = vpack.c.bf16 %v429_v20, %v427_v19  ;;  %v268_v25 = vld [vmem:[%s740_s3 + $0xe8] sm:$0xff]  ;;  %v267_v27 = vld [vmem:[%s740_s3 + $0xe0] sm:$0xff] }
   0x6   :  { %89 = vmatprep.subr.bf16.mxu0 %v73_v13  ;;  %v60_v24 = vpack.c.bf16 %v56_v22, %v54_v21  ;;  %v270_v26 = vld [vmem:[%s740_s3 + $0xf8] sm:$0xff]  ;;  %v269_v29 = vld [vmem:[%s740_s3 + $0xf0] sm:$0xff]  ;;  %v264_v30 = vld [vmem:[%s740_s3 + $0xc8] sm:$0xff] }
   0x7   :  { %90 = vmatpush1.bf16.msra.mxu0 %v72_v17  ;;  %v294_v28 = vpack.c.bf16 %v270_v26, %v268_v25  ;;  %v266_v31 = vld [vmem:[%s740_s3 + $0xd8] sm:$0xff]  ;;  %v293_v32 = vpack.c.bf16 %v269_v29, %v267_v27  ;;  %v263_v34 = vld [vmem:[%s740_s3 + $0xc0] sm:$0xff]  ;;  %v265_v35 = vld [vmem:[%s740_s3 + $0xd0] sm:$0xff] }
   0x8   :  { %91 = vmatprep.subr.bf16.mxu0 %v71_v18  ;;  %v292_v33 = vpack.c.bf16 %v266_v31, %v264_v30  ;;  %v260_v36 = vld [vmem:[%s740_s3 + $0xa8] sm:$0xff]  ;;  %v262_v37 = vld [vmem:[%s740_s3 + $0xb8] sm:$0xff]  ;;  %v291_v38 = vpack.c.bf16 %v265_v35, %v263_v34  ;;  %v259_v40 = vld [vmem:[%s740_s3 + $0xa0] sm:$0xff] }
   0x9   :  { %29 = vadd.xlane.f32.xlu0 %v28_v8  ;;  %302 = vmatprep.subr.bf16.mxu1 %v294_v28  ;;  %v290_v39 = vpack.c.bf16 %v262_v37, %v260_v36  ;;  %v261_v41 = vld [vmem:[%s740_s3 + $0xb0] sm:$0xff]  ;;  %v53_v49 = vld [vmem:[%s739_s1 + $0x20] sm:$0xff]  ;;  %v50_v52 = vld [vmem:[%s739_s1 + $0x8] sm:$0xff] }
   0xa   :  { %303 = vmatpush1.bf16.msra.mxu1 %v293_v32  ;;  %v289_v42 = vpack.c.bf16 %v261_v41, %v259_v40  ;;  %v55_v50 = vld [vmem:[%s739_s1 + $0x30] sm:$0xff]  ;;  %v52_v53 = vld [vmem:[%s739_s1 + $0x18] sm:$0xff]  ;;  %v49_v58 = vld [vmem:[%s739_s1] sm:$0xff] }
   0xb   :  { %92 = vmatpush1.bf16.msra.mxu0 %v70_v23  ;;  %304 = vmatprep.subr.bf16.mxu1 %v292_v33  ;;  %v59_v55 = vpack.c.bf16 %v55_v50, %v53_v49  ;;  %v58_v57 = vpack.c.bf16 %v52_v53, %v50_v52  ;;  %v51_v59 = vld [vmem:[%s739_s1 + $0x10] sm:$0xff]  ;;  %v442_v61 = vld [vmem:[%s739_s1 + $0xa8] sm:$0xff]  ;;  %v444_v62 = vld [vmem:[%s739_s1 + $0xb8] sm:$0xff] }
   0xc   :  { %133 = vmatprep.subr.bf16.mxu0 %v60_v24  ;;  %v174_v3 = vpack.c.bf16 %v444_v62, %v442_v61  ;;  %v441_v4 = vld [vmem:[%s739_s1 + $0xa0] sm:$0xff]  ;;  %v443_v5 = vld [vmem:[%s739_s1 + $0xb0] sm:$0xff]  ;;  %v438_v6 = vld [vmem:[%s739_s1 + $0x88] sm:$0xff] }
   0xd   :  { %v173_v9 = vpack.c.bf16 %v443_v5, %v441_v4  ;;  %v437_v11 = vld [vmem:[%s739_s1 + $0x80] sm:$0xff]  ;;  %v439_v13 = vld [vmem:[%s739_s1 + $0x90] sm:$0xff]  ;;  %v256_v17 = vld [vmem:[%s740_s3 + $0x88] sm:$0xff] }
   0xe   :  { %305 = vmatpush1.bf16.msra.mxu1 %v291_v38  ;;  %v171_v15 = vpack.c.bf16 %v439_v13, %v437_v11  ;;  %v258_v18 = vld [vmem:[%s740_s3 + $0x98] sm:$0xff]  ;;  %v252_v21 = vld [vmem:[%s740_s3 + $0x68] sm:$0xff]  ;;  %v251_v24 = vld [vmem:[%s740_s3 + $0x60] sm:$0xff] }
   0xf   :  { %306 = vmatprep.subr.bf16.mxu1 %v290_v39  ;;  %v288_v19 = vpack.c.bf16 %v258_v18, %v256_v17  ;;  %v254_v22 = vld [vmem:[%s740_s3 + $0x78] sm:$0xff]  ;;  %v253_v25 = vld [vmem:[%s740_s3 + $0x70] sm:$0xff]  ;;  %v248_v27 = vld [vmem:[%s740_s3 + $0x48] sm:$0xff] }
  0x10   :  { %v286_v23 = vpack.c.bf16 %v254_v22, %v252_v21  ;;  %v285_v26 = vpack.c.bf16 %v253_v25, %v251_v24  ;;  %v250_v28 = vld [vmem:[%s740_s3 + $0x58] sm:$0xff]  ;;  %v247_v30 = vld [vmem:[%s740_s3 + $0x40] sm:$0xff]  ;;  %v249_v31 = vld [vmem:[%s740_s3 + $0x50] sm:$0xff] }
  0x11   :  { %v284_v29 = vpack.c.bf16 %v250_v28, %v248_v27  ;;  %v283_v32 = vpack.c.bf16 %v249_v31, %v247_v30  ;;  %v244_v33 = vld [vmem:[%s740_s3 + $0x28] sm:$0xff]  ;;  %v246_v34 = vld [vmem:[%s740_s3 + $0x38] sm:$0xff]  ;;  %v243_v36 = vld [vmem:[%s740_s3 + $0x20] sm:$0xff] }
  0x12   :  { %307 = vmatpush1.bf16.msra.mxu1 %v289_v42  ;;  %v282_v35 = vpack.c.bf16 %v246_v34, %v244_v33  ;;  %v245_v37 = vld [vmem:[%s740_s3 + $0x30] sm:$0xff]  ;;  %v240_v39 = vld [vmem:[%s740_s3 + $0x8] sm:$0xff]  ;;  %v242_v40 = vld [vmem:[%s740_s3 + $0x18] sm:$0xff] }
  0x13   :  { %308 = vmatprep.subr.bf16.mxu1 %v288_v19  ;;  %v281_v38 = vpack.c.bf16 %v245_v37, %v243_v36  ;;  %v280_v41 = vpack.c.bf16 %v242_v40, %v240_v39  ;;  %v239_v42 = vld [vmem:[%s740_s3] sm:$0xff]  ;;  %v277_v49 = vld [vmem:[%s740_s3 + $0x130] sm:$0xff]  ;;  %v274_v52 = vld [vmem:[%s740_s3 + $0x118] sm:$0xff] }
  0x14   :  { %v221_v5 = vld [vmem:[%s741_s2] sm:$0x3] }
  0x8e   :  { %v33_v43 = vpop.xlane.xlu0 %32  ;;  %v36_v47 = vpop.xlane.xlu1 %35 }
  0x8f   :  { %v38_v44 = vmax.f32 %v33_v43, 1e-12  ;;  %v39_v48 = vmax.f32 %v36_v47, 1e-12  ;;  %v241_v43 = vld [vmem:[%s740_s3 + $0x10] sm:$0xff] }
  0x91   :  { %449 = vrsqrt.f32 %v38_v44  ;;  %v279_v44 = vpack.c.bf16 %v241_v43, %v239_v42 }
  0x92   :  { %v30_v45 = vpop.xlane.xlu0 %29 }
  0x93   :  { %v37_v46 = vmax.f32 %v30_v45, 1e-12  ;;  %v276_v45 = vld [vmem:[%s740_s3 + $0x128] sm:$0xff] }
  0x95   :  { %451 = vrsqrt.f32 %v37_v46  ;;  %v278_v46 = vld [vmem:[%s740_s3 + $0x138] sm:$0xff] }
  0x96   :  { %453 = vrsqrt.f32 %v39_v48  ;;  %v298_v47 = vpack.c.bf16 %v278_v46, %v276_v45  ;;  %v275_v48 = vld [vmem:[%s740_s3 + $0x120] sm:$0xff] }
  0x97   :  { %v297_v50 = vpack.c.bf16 %v277_v49, %v275_v48 }
  0x9e   :  { %v450_v51 = vpop.eup %449 }
  0x9f   :  { %v44_v54 = vmul.f32 %v450_v51, %v495_v0  ;;  %v57_v0 = vpack.c.bf16 %v51_v59, %v49_v58  ;;  %v272_v51 = vld [vmem:[%s740_s3 + $0x108] sm:$0xff]  ;;  %v223_v59 = vlaneseq }
  0xa0   :  { %v296_v53 = vpack.c.bf16 %v274_v52, %v272_v51 }
  0xa1   :  { %v47_v56 = vpack.c.bf16 %v44_v54, %v44_v54  ;;  %v271_v54 = vld [vmem:[%s740_s3 + $0x100] sm:$0xff]  ;;  %v224_v62 = vshrl.u32 %v223_v59, 7  ;;  %vm378_vm1 = vcmp.lt.s32.totalorder %v223_v59, 160 }
  0xa2   :  { %v452_v60 = vpop.eup %451 }
  0xa3   :  { %435 = vmatmul.mubr.msk.bf16.vlgmr.msra.gmra.mxu0 %vm27_vm0, %v47_v56  ;;  %v43_v63 = vmul.f32 %v452_v60, %v500_v1  ;;  %v440_v1 = vld [vmem:[%s739_s1 + $0x98] sm:$0xff]  ;;  %v454_v8 = vpop.eup %453 }
  0xa4   :  { %134 = vmatpush1.bf16.msra.mxu0 %v59_v55  ;;  %153 = vmatprep.mubr.bf16.mxu0 %v455_v12  ;;  %v172_v10 = vpack.c.bf16 %v440_v1, %v438_v6  ;;  %v45_v14 = vmul.f32 %v454_v8, %v505_v2  ;;  %v255_v2 = vld [vmem:[%s740_s3 + $0x80] sm:$0xff]  ;;  %v273_v55 = vld [vmem:[%s740_s3 + $0x110] sm:$0xff]  ;;  %v229_v6 = vsub.s32 1, %v224_v62 }
  0xa5   :  { %135 = vmatprep.subr.bf16.mxu0 %v58_v57  ;;  %v46_v7 = vpack.c.bf16 %v43_v63, %v43_v63  ;;  %v295_v56 = vpack.c.bf16 %v273_v55, %v271_v54 }
  0xa6   :  { %v48_v16 = vpack.c.bf16 %v45_v14, %v45_v14  ;;  %v230_v13 = vrot.slane %v221_v5, %v229_v6 }
  0xa8   :  { %136 = vmatpush1.bf16.msra.mxu0 %v57_v0 }
  0xa9   :  { %190 = vmatprep.subr.bf16.mxu0 %v174_v3  ;;  %v225_v3 = vsub.s32 0, %v224_v62 }
  0xab   :  { %436 = vmatmul.mubr.msk.bf16.vlgmr.msra.gmra.mxu0 %vm27_vm0, %v46_v7  ;;  %v226_v8 = vrot.slane %v221_v5, %v225_v3 }
  0xac   :  { %191 = vmatpush1.bf16.msra.mxu0 %v173_v9  ;;  %210 = vmatprep.mubr.bf16.mxu0 %v455_v12  ;;  %v257_v12 = vld [vmem:[%s740_s3 + $0x90] sm:$0xff] }
  0xad   :  { %192 = vmatprep.subr.bf16.mxu0 %v172_v10  ;;  %v287_v20 = vpack.c.bf16 %v257_v12, %v255_v2 }
  0xaf   :  { %309 = vmatpush1.bf16.msra.mxu1 %v287_v20 }
  0xb0   :  { %193 = vmatpush1.bf16.msra.mxu0 %v171_v15  ;;  %310 = vmatprep.subr.bf16.mxu1 %v286_v23 }
  0xb3   :  { %445 = vmatmul.mubr.msk.bf16.vlgmr.msra.gmra.mxu0 %vm27_vm0, %v48_v16  ;;  %311 = vmatpush1.bf16.msra.mxu1 %v285_v26 }
  0xb4   :  { %312 = vmatprep.subr.bf16.mxu1 %v284_v29 }
  0xb7   :  { %313 = vmatpush1.bf16.msra.mxu1 %v283_v32 }
  0xb8   :  { %314 = vmatprep.subr.bf16.mxu1 %v282_v35  ;;  %v456_v35 = vmov 1966171168  }
  0xb9   :  { %v362_v36 = vunpack.c.l.s4 %v456_v35 }
  0xbb   :  { %315 = vmatpush1.bf16.msra.mxu1 %v281_v38  ;;  %v363_v45 = vunpack.c.0.s8 %v362_v36 }
  0xbc   :  { %316 = vmatprep.subr.bf16.mxu1 %v280_v41 }
  0xbd   :  { %v366_v52 = vsub.s32 %v363_v45, %v224_v62 }
  0xbf   :  { %317 = vmatpush1.bf16.msra.mxu1 %v279_v44 }
  0xc0   :  { %330 = vmatprep.subr.bf16.mxu1 %v298_v47 }
  0xc3   :  { %331 = vmatpush2.bf16.msra.mxu1 %v297_v50 }
  0xc4   :  { %332 = vmatprep.subr.bf16.mxu1 %v296_v53 }
  0xc7   :  { %333 = vmatpush2.bf16.msra.mxu1 %v295_v56 }
 0x163   :  { %v111_v57 = vpop.f32.mrf.mxu0 }
 0x165   :  { %v113_v58 = vpop.f32.mrf.mxu0 }
 0x167   :  { %v115_v60 = vpop.f32.mrf.mxu0 }
 0x169   :  { %v116_v61 = vpop.f32.mrf.mxu0 }
 0x16b   :  { %v155_v63 = vpop.f32.mrf.mxu0 }
 0x16c   :  { %v156_v7 = vadd.f32 %v155_v63, %v111_v57 }
 0x16d   :  { %v157_v0 = vpop.f32.mrf.mxu0 }
 0x16e   :  { %v158_v10 = vadd.f32 %v157_v0, %v113_v58 }
 0x16f   :  { %v159_v4 = vpop.f32.mrf.mxu0 }
 0x171   :  { %v160_v1 = vpop.f32.mrf.mxu0 }
 0x173   :  { %v212_v9 = vpop.f32.mrf.mxu0 }
 0x174   :  { %v219_v11 = vadd.f32 %v212_v9, %v156_v7 }
 0x175   :  { %v214_v14 = vpop.f32.mrf.mxu0 }
 0x176   :  { %v233_v15 = vadd.f32 %v226_v8, %v219_v11  ;;  %v220_v16 = vadd.f32 %v214_v14, %v158_v10 }
 0x177   :  { %v216_v17 = vpop.f32.mrf.mxu0 }
 0x178   :  { %v234_v18 = vadd.f32 %v230_v13, %v220_v16  ;;  %v235_v19 = vmax.f32 %v233_v15, 0.0 }
 0x179   :  { %v217_v2 = vpop.f32.mrf.mxu0 }
 0x17a   :  { %v236_v12 = vmax.f32 %v234_v18, 0.0  ;;  %v237_v21 = vpack.c.bf16 %v235_v19, %v235_v19 }
 0x17c   :  { %v238_v20 = vpack.c.bf16 %v236_v12, %v236_v12 }
 0x17e   :  { %446 = vmatprep.mubr.msk.bf16.mxu1 %vm27_vm0, %v238_v20 }
 0x17f   :  { %335 = vmatmul.mubr.bf16.vlgmr.msra.gmra.mxu1 %v237_v21 }
 0x23f   :  { %v336_v22 = vpop.f32.mrf.mxu1 }
 0x240   :  { %343 = vst [vmem:[%s742_s4] sm:$0xff] %v336_v22  ;;  %v345_v23 = vrot.slane %v336_v22, 4  ;;  %v381_v24 = vmul.f32 %v336_v22, %v336_v22 }
 0x241   :  { %v338_v25 = vpop.f32.mrf.mxu1 }
 0x242   :  { %v346_v26 = vadd.f32 %v345_v23, %v336_v22  ;;  %v383_v27 = vrot.slane %v381_v24, 4  ;;  %344 = vst.msk [vmem:[%s742_s4 + $0x8] sm:$0xff] %vm27_vm0, %v338_v25  ;;  %v351_v28 = vsel %vm27_vm0, %v338_v25, 0.0  ;;  %v382_v29 = vmul.f32 %v338_v25, %v338_v25 }
 0x243   :  { %v352_v30 = vrot.slane %v351_v28, 4  ;;  %v340_v31 = vpop.f32.mrf.mxu1 }
 0x244   :  { %v347_v32 = vrot.slane %v346_v26, 2  ;;  %v384_v33 = vadd.f32 %v383_v27, %v381_v24  ;;  %v389_v34 = vsel %vm27_vm0, %v382_v29, 0.0 }
 0x245   :  { %v353_v37 = vadd.f32 %v352_v30, %v351_v28  ;;  %v390_v38 = vrot.slane %v389_v34, 4  ;;  %v341_v39 = vpop.f32.mrf.mxu1 }
 0x246   :  { %v348_v40 = vadd.f32 %v347_v32, %v346_v26  ;;  %v385_v41 = vrot.slane %v384_v33, 2 }
 0x247   :  { %v354_v42 = vrot.slane %v353_v37, 2  ;;  %v391_v43 = vadd.f32 %v390_v38, %v389_v34 }
 0x248   :  { %v386_v44 = vadd.f32 %v385_v41, %v384_v33  ;;  %v349_v46 = vrot.slane %v348_v40, 1 }
 0x249   :  { %v355_v47 = vadd.f32 %v354_v42, %v353_v37  ;;  %v392_v48 = vrot.slane %v391_v43, 2 }
 0x24a   :  { %v387_v49 = vrot.slane %v386_v44, 1  ;;  %v350_v53 = vadd.f32 %v349_v46, %v348_v40 }
 0x24b   :  { %v356_v50 = vrot.slane %v355_v47, 1  ;;  %v393_v51 = vadd.f32 %v392_v48, %v391_v43 }
 0x24c   :  { %v388_v56 = vadd.f32 %v387_v49, %v386_v44 }
 0x24d   :  { %v357_v54 = vadd.f32 %v356_v50, %v355_v47  ;;  %v394_v55 = vrot.slane %v393_v51, 1 }
 0x24f   :  { %v360_v57 = vcombine.low %v350_v53, %v357_v54  ;;  %v395_v58 = vadd.f32 %v394_v55, %v393_v51 }
 0x251   :  { %v367_v60 = vrot.slane %v360_v57, %v366_v52  ;;  %v398_v61 = vcombine.low %v388_v56, %v395_v58 }
 0x253   :  { %v374_v63 = vrot.slane %v367_v60, %v366_v52  ;;  %v405_v0 = vrot.slane %v398_v61, %v366_v52 }
 0x255   :  { %380 = vst.msk [vmem:[%s743_s5] sm:$0x3] %vm378_vm1, %v374_v63  ;;  %v412_v3 = vrot.slane %v405_v0, %v366_v52 }
 0x257   :  { %414 = vst.msk [vmem:[%s744_s6] sm:$0x3] %vm378_vm1, %v412_v3 }

</bundles_post_ra>
